<compile_context>
chip_gen: v5e
topology: v5e:2x2
jax: 0.10.0
libtpu: 0.0.40
codegen_flags: <defaults>
</compile_context>

<pallas_src>
import jax
import jax.numpy as jnp
from jax.experimental import pallas as pl
from jax.experimental.pallas import tpu as pltpu

LANE = 128
BATCH_GRAN = 16          # batch-tile granularity (safe sublane multiple for bf16)
MAX_TILE_B = 1024        # large-batch tile (review: 256 leaves per-step overhead exposed)


def _round_up(n: int, m: int) -> int:
    return ((n + m - 1) // m) * m


def dqn_kernel(x_ref, w1_ref, w2_ref, w3_ref, w4_ref, b_ref, o_ref):
    """Fused MLP: relu(x@W1+b1) -> relu(@W2+b2) -> relu(@W3+b3) -> @W4+b4.

    Dropout(p=0.1) is identity in eval/inference mode, so it is a no-op here.
    bf16 MXU inputs, f32 accumulation, ReLU fused with the bf16 downcast.
    """
    h1 = w1_ref.shape[1]
    h2 = w2_ref.shape[1]
    h3 = w3_ref.shape[1]
    ho = w4_ref.shape[1]

    b = b_ref[...]                      # [4, bw] f32 packed biases
    x = x_ref[...]                      # [tile_b, S] bf16 (already cast in wrapper)

    h = jnp.dot(x, w1_ref[...], preferred_element_type=jnp.float32) + b[0:1, :h1]
    h = jnp.maximum(h, 0.0).astype(jnp.bfloat16)        # dropout (eval) -> identity

    h = jnp.dot(h, w2_ref[...], preferred_element_type=jnp.float32) + b[1:2, :h2]
    h = jnp.maximum(h, 0.0).astype(jnp.bfloat16)        # dropout (eval) -> identity

    h = jnp.dot(h, w3_ref[...], preferred_element_type=jnp.float32) + b[2:3, :h3]
    h = jnp.maximum(h, 0.0).astype(jnp.bfloat16)

    out = jnp.dot(h, w4_ref[...], preferred_element_type=jnp.float32) + b[3:4, :ho]
    o_ref[...] = out.astype(o_ref.dtype)


def prepare_params(params):
    """One-time prep: cast weights to bf16 ([in, out], transposed vs. PyTorch), pad the
    final output dim to lane width, and pack the four biases into one [4, bw] f32 array.
    Returns (prepped_params, out_pad)."""
    h1 = params["w1"].shape[1]
    h2 = params["w2"].shape[1]
    h3 = params["w3"].shape[1]
    action_size = params["w4"].shape[1]
    out_pad = _round_up(action_size, LANE)
    bw = max(LANE, out_pad, h1, h2, h3)

    def pad_bias(bvec):
        bvec = bvec.reshape(1, -1).astype(jnp.float32)
        return jnp.pad(bvec, ((0, 0), (0, bw - bvec.shape[1])))

    bias_pack = jnp.concatenate(
        [pad_bias(params["b1"]), pad_bias(params["b2"]),
         pad_bias(params["b3"]), pad_bias(params["b4"])], axis=0)

    prepped = {
        "w1": params["w1"].astype(jnp.bfloat16),                       # [S, 128]
        "w2": params["w2"].astype(jnp.bfloat16),                       # [128, 128]
        "w3": params["w3"].astype(jnp.bfloat16),                       # [128, 64]
        "w4": jnp.pad(params["w4"],
                      ((0, 0), (0, out_pad - action_size))).astype(jnp.bfloat16),
        "b": bias_pack,                                                # [4, bw] f32
    }
    return prepped, out_pad


def simple_dqn_forward(x, params, *, tile_b=None):
    """Run the fused SimpleDQN forward Pallas kernel.

    x: [B, state_size] float32
    params: dict with w1..w4 ([in, out], f32) and b1..b4 ([1, out], f32).
    Returns [B, action_size] float32 Q-values.
    """
    B, S = x.shape
    action_size = params["w4"].shape[1]
    h1 = params["w1"].shape[1]
    h2 = params["w2"].shape[1]
    h3 = params["w3"].shape[1]

    prepped, out_pad = prepare_params(params)

    if tile_b is None:
        if B >= 2 * MAX_TILE_B:
            tile_b = MAX_TILE_B
        else:
            # Aim for >= 2 grid steps when the batch allows so the "parallel" axis can
            # shard across both v7x TensorCores; keep tiles sublane-aligned.
            tile_b = max(BATCH_GRAN, _round_up((B + 1) // 2, BATCH_GRAN))
            tile_b = min(tile_b, MAX_TILE_B)
    b_pad = _round_up(B, tile_b)
    grid = (b_pad // tile_b,)

    # bf16 cast once in the wrapper; skip the pad round-trip when B is a tile multiple.
    x_b = x.astype(jnp.bfloat16)
    if b_pad != B:
        x_b = jnp.pad(x_b, ((0, b_pad - B), (0, 0)))

    flops = 2 * b_pad * (S * h1 + h1 * h2 + h2 * h3 + h3 * out_pad)
    bytes_accessed = (
        b_pad * S * 2                                                   # x (bf16)
        + sum(int(prepped[k].size) * prepped[k].dtype.itemsize for k in prepped)
        + b_pad * out_pad * 2                                           # out (bf16)
    )

    def resident(shape):
        # Weights/biases: same block every grid step -> stay VMEM-resident.
        return pl.BlockSpec(shape, lambda i: (0,) * len(shape))

    in_specs = [
        pl.BlockSpec((tile_b, S), lambda i: (i, 0)),   # x: tiled over batch, unpadded K
        resident(prepped["w1"].shape),
        resident(prepped["w2"].shape),
        resident(prepped["w3"].shape),
        resident(prepped["w4"].shape),
        resident(prepped["b"].shape),
    ]
    out_specs = pl.BlockSpec((tile_b, out_pad), lambda i: (i, 0))

    out_padded = pl.pallas_call(
        dqn_kernel,
        out_shape=jax.ShapeDtypeStruct((b_pad, out_pad), jnp.bfloat16),
        grid=grid,
        in_specs=in_specs,
        out_specs=out_specs,
        compiler_params=pltpu.CompilerParams(
            dimension_semantics=("parallel",),       # megacore batch sharding on v7x
            vmem_limit_bytes=32 * 1024 * 1024,       # portable ceiling (v7x: 64 MiB/TC)
        ),
        cost_estimate=pl.CostEstimate(
            flops=flops, transcendentals=0, bytes_accessed=bytes_accessed),
    )(x_b, prepped["w1"], prepped["w2"], prepped["w3"], prepped["w4"], prepped["b"])

    # Slice away batch / action padding; return f32 Q-values like the PyTorch module.
    return out_padded[:B, :action_size].astype(jnp.float32)


def init_params(key, state_size, action_size):
    """Deterministic init mimicking PyTorch nn.Linear default:
    U(-1/sqrt(fan_in), 1/sqrt(fan_in)) for both weight and bias.
    Weights are stored transposed as [in, out]; biases as [1, out]."""
    dims = [(state_size, 128), (128, 128), (128, 64), (64, action_size)]
    params = {}
    keys = jax.random.split(key, 2 * len(dims))
    for i, (fan_in, fan_out) in enumerate(dims):
        bound = 1.0 / jnp.sqrt(jnp.float32(fan_in))
        w = jax.random.uniform(keys[2 * i], (fan_in, fan_out),
                               minval=-bound, maxval=bound, dtype=jnp.float32)
        b = jax.random.uniform(keys[2 * i + 1], (1, fan_out),
                               minval=-bound, maxval=bound, dtype=jnp.float32)
        params[f"w{i + 1}"] = w
        params[f"b{i + 1}"] = b
    return params


def _ref_forward_bf16(x, params):
    """Plain-JAX reference using the same bf16-weight / bf16-activation / f32-accumulate
    math as the kernel (including the final bf16 writeback)."""
    def layer(h, w, b, relu):
        out = jnp.dot(h.astype(jnp.bfloat16), w.astype(jnp.bfloat16),
                      preferred_element_type=jnp.float32) + b
        if relu:
            out = jnp.maximum(out, 0.0).astype(jnp.bfloat16)
        return out

    h = layer(x, params["w1"], params["b1"], True)
    h = layer(h, params["w2"], params["b2"], True)
    h = layer(h, params["w3"], params["b3"], True)
    out = layer(h, params["w4"], params["b4"], False)
    return out.astype(jnp.bfloat16).astype(jnp.float32)


if __name__ == "__main__":
    state_size = 32
    action_size = 16
    batch = 8

    key = jax.random.PRNGKey(0)
    k_params, k_x = jax.random.split(key)

    params = init_params(k_params, state_size, action_size)
    x = jax.random.normal(k_x, (batch, state_size), dtype=jnp.float32)

    out = simple_dqn_forward(x, params)
    out = jax.block_until_ready(out)
    assert out.shape == (batch, action_size)

    # Reference with the same bf16 math.
    ref_bf16 = _ref_forward_bf16(x, params)
    assert jnp.allclose(out, ref_bf16, atol=1e-2, rtol=1e-2)

    # Loose check against the full-f32 forward (semantics of the PyTorch module).
    ref_f32 = x
    ref_f32 = jnp.maximum(ref_f32 @ params["w1"] + params["b1"], 0.0)
    ref_f32 = jnp.maximum(ref_f32 @ params["w2"] + params["b2"], 0.0)
    ref_f32 = jnp.maximum(ref_f32 @ params["w3"] + params["b3"], 0.0)
    ref_f32 = ref_f32 @ params["w4"] + params["b4"]
    assert jnp.allclose(out, ref_f32, atol=5e-2, rtol=5e-2)

    print("KERNEL_OK")
</pallas_src>

<mosaic_0001>
module attributes {stable_mosaic.version = 11 : i64} {
  func.func @dqn_kernel(%arg0: i32, %arg1: memref<16x32xbf16, #tpu.memory_space<vmem>>, %arg2: memref<32x128xbf16, #tpu.memory_space<vmem>>, %arg3: memref<128x128xbf16, #tpu.memory_space<vmem>>, %arg4: memref<128x64xbf16, #tpu.memory_space<vmem>>, %arg5: memref<64x128xbf16, #tpu.memory_space<vmem>>, %arg6: memref<4x128xf32, #tpu.memory_space<vmem>>, %arg7: memref<16x128xbf16, #tpu.memory_space<vmem>>) attributes {dimension_semantics = [#tpu.dimension_semantics<parallel>], iteration_bounds = array<i64: 1>, scalar_prefetch = 0 : i64, scratch_operands = 0 : i64, tpu.core_type = #tpu.core_type<tc>, window_params = [{transform_indices = @transform_0, window_bounds = array<i64: 16, 32>}, {pipeline_mode = #tpu.pipeline_mode<synchronous>, transform_indices = @transform_1, window_bounds = array<i64: 32, 128>}, {pipeline_mode = #tpu.pipeline_mode<synchronous>, transform_indices = @transform_2, window_bounds = array<i64: 128, 128>}, {pipeline_mode = #tpu.pipeline_mode<synchronous>, transform_indices = @transform_3, window_bounds = array<i64: 128, 64>}, {pipeline_mode = #tpu.pipeline_mode<synchronous>, transform_indices = @transform_4, window_bounds = array<i64: 64, 128>}, {pipeline_mode = #tpu.pipeline_mode<synchronous>, transform_indices = @transform_5, window_bounds = array<i64: 4, 128>}, {transform_indices = @transform_6, window_bounds = array<i64: 16, 128>}]} {
    %c0 = arith.constant 0 : index
    %c0_0 = arith.constant 0 : index
    %0 = vector.load %arg6[%c0, %c0_0] : memref<4x128xf32, #tpu.memory_space<vmem>>, vector<4x128xf32>
    %c0_1 = arith.constant 0 : index
    %c0_2 = arith.constant 0 : index
    %1 = vector.load %arg1[%c0_1, %c0_2] : memref<16x32xbf16, #tpu.memory_space<vmem>>, vector<16x32xbf16>
    %c0_3 = arith.constant 0 : index
    %c0_4 = arith.constant 0 : index
    %2 = vector.load %arg2[%c0_3, %c0_4] : memref<32x128xbf16, #tpu.memory_space<vmem>>, vector<32x128xbf16>
    %cst = arith.constant dense<0.000000e+00> : vector<16x128xf32>
    %3 = tpu.matmul %1, %2, %cst {dimension_numbers = #tpu.dot_dimension_numbers<[1], [0], [0], [1], [0, 0, 1, 1], [], []>} : vector<16x32xbf16>, vector<32x128xbf16>, vector<16x128xf32> -> vector<16x128xf32>
    %4 = vector.extract_strided_slice %0 {offsets = [0, 0], sizes = [1, 128], strides = [1, 1]} : vector<4x128xf32> to vector<1x128xf32>
    %5 = vector.broadcast %4 : vector<1x128xf32> to vector<16x128xf32>
    %6 = arith.addf %3, %5 : vector<16x128xf32>
    %cst_5 = arith.constant 0.000000e+00 : f32
    %7 = vector.broadcast %cst_5 : f32 to vector<16x128xf32>
    %8 = arith.maximumf %6, %7 : vector<16x128xf32>
    %9 = arith.truncf %8 : vector<16x128xf32> to vector<16x128xbf16>
    %c0_6 = arith.constant 0 : index
    %c0_7 = arith.constant 0 : index
    %10 = vector.load %arg3[%c0_6, %c0_7] : memref<128x128xbf16, #tpu.memory_space<vmem>>, vector<128x128xbf16>
    %cst_8 = arith.constant dense<0.000000e+00> : vector<16x128xf32>
    %11 = tpu.matmul %9, %10, %cst_8 {dimension_numbers = #tpu.dot_dimension_numbers<[1], [0], [0], [1], [0, 0, 1, 1], [], []>} : vector<16x128xbf16>, vector<128x128xbf16>, vector<16x128xf32> -> vector<16x128xf32>
    %12 = vector.extract_strided_slice %0 {offsets = [1, 0], sizes = [1, 128], strides = [1, 1]} : vector<4x128xf32> to vector<1x128xf32>
    %13 = vector.broadcast %12 : vector<1x128xf32> to vector<16x128xf32>
    %14 = arith.addf %11, %13 : vector<16x128xf32>
    %cst_9 = arith.constant 0.000000e+00 : f32
    %15 = vector.broadcast %cst_9 : f32 to vector<16x128xf32>
    %16 = arith.maximumf %14, %15 : vector<16x128xf32>
    %17 = arith.truncf %16 : vector<16x128xf32> to vector<16x128xbf16>
    %c0_10 = arith.constant 0 : index
    %c0_11 = arith.constant 0 : index
    %18 = vector.load %arg4[%c0_10, %c0_11] : memref<128x64xbf16, #tpu.memory_space<vmem>>, vector<128x64xbf16>
    %cst_12 = arith.constant dense<0.000000e+00> : vector<16x64xf32>
    %19 = tpu.matmul %17, %18, %cst_12 {dimension_numbers = #tpu.dot_dimension_numbers<[1], [0], [0], [1], [0, 0, 1, 1], [], []>} : vector<16x128xbf16>, vector<128x64xbf16>, vector<16x64xf32> -> vector<16x64xf32>
    %20 = vector.extract_strided_slice %0 {offsets = [2, 0], sizes = [1, 64], strides = [1, 1]} : vector<4x128xf32> to vector<1x64xf32>
    %21 = vector.broadcast %20 : vector<1x64xf32> to vector<16x64xf32>
    %22 = arith.addf %19, %21 : vector<16x64xf32>
    %cst_13 = arith.constant 0.000000e+00 : f32
    %23 = vector.broadcast %cst_13 : f32 to vector<16x64xf32>
    %24 = arith.maximumf %22, %23 : vector<16x64xf32>
    %25 = arith.truncf %24 : vector<16x64xf32> to vector<16x64xbf16>
    %c0_14 = arith.constant 0 : index
    %c0_15 = arith.constant 0 : index
    %26 = vector.load %arg5[%c0_14, %c0_15] : memref<64x128xbf16, #tpu.memory_space<vmem>>, vector<64x128xbf16>
    %cst_16 = arith.constant dense<0.000000e+00> : vector<16x128xf32>
    %27 = tpu.matmul %25, %26, %cst_16 {dimension_numbers = #tpu.dot_dimension_numbers<[1], [0], [0], [1], [0, 0, 1, 1], [], []>} : vector<16x64xbf16>, vector<64x128xbf16>, vector<16x128xf32> -> vector<16x128xf32>
    %28 = vector.extract_strided_slice %0 {offsets = [3, 0], sizes = [1, 128], strides = [1, 1]} : vector<4x128xf32> to vector<1x128xf32>
    %29 = vector.broadcast %28 : vector<1x128xf32> to vector<16x128xf32>
    %30 = arith.addf %27, %29 : vector<16x128xf32>
    %31 = arith.truncf %30 : vector<16x128xf32> to vector<16x128xbf16>
    %c0_17 = arith.constant 0 : index
    %c0_18 = arith.constant 0 : index
    %32 = vector.load %arg7[%c0_17, %c0_18] : memref<16x128xbf16, #tpu.memory_space<vmem>>, vector<16x128xbf16>
    tpu.vector_store %arg7[%c0_17, %c0_18], %31 {strides = array<i32>} : memref<16x128xbf16, #tpu.memory_space<vmem>>, vector<16x128xbf16>,
    return
  }
  func.func @transform_0(%arg0: i32) -> (i32, i32) {
    %c0_i32 = arith.constant 0 : i32
    %c0_i32_0 = arith.constant 0 : i32
    return %arg0, %c0_i32 : i32, i32
  }
  func.func @transform_1(%arg0: i32) -> (i32, i32) {
    %c0_i32 = arith.constant 0 : i32
    %c0_i32_0 = arith.constant 0 : i32
    %c0_i32_1 = arith.constant 0 : i32
    return %c0_i32, %c0_i32_0 : i32, i32
  }
  func.func @transform_2(%arg0: i32) -> (i32, i32) {
    %c0_i32 = arith.constant 0 : i32
    %c0_i32_0 = arith.constant 0 : i32
    %c0_i32_1 = arith.constant 0 : i32
    return %c0_i32, %c0_i32_0 : i32, i32
  }
  func.func @transform_3(%arg0: i32) -> (i32, i32) {
    %c0_i32 = arith.constant 0 : i32
    %c0_i32_0 = arith.constant 0 : i32
    %c0_i32_1 = arith.constant 0 : i32
    return %c0_i32, %c0_i32_0 : i32, i32
  }
  func.func @transform_4(%arg0: i32) -> (i32, i32) {
    %c0_i32 = arith.constant 0 : i32
    %c0_i32_0 = arith.constant 0 : i32
    %c0_i32_1 = arith.constant 0 : i32
    return %c0_i32, %c0_i32_0 : i32, i32
  }
  func.func @transform_5(%arg0: i32) -> (i32, i32) {
    %c0_i32 = arith.constant 0 : i32
    %c0_i32_0 = arith.constant 0 : i32
    %c0_i32_1 = arith.constant 0 : i32
    return %c0_i32, %c0_i32_0 : i32, i32
  }
  func.func @transform_6(%arg0: i32) -> (i32, i32) {
    %c0_i32 = arith.constant 0 : i32
    %c0_i32_0 = arith.constant 0 : i32
    return %arg0, %c0_i32 : i32, i32
  }
}

</mosaic_0001>

<bundles_post_ra>
// kernel: tpu_custom_call.1
= control target key start
LH: loop header
LB: loop body
LE: loop exit
PB: predicated region body
PF: predicated region fallthrough
CT: control target
= control target key end

     0   :  { %11 = vsyncpa [#allocation3], 0  ;;  %s707_s0 = inlined_call_operand.hbm [shape: bf16[16,32], index: 0, kind: input, shape index: {}]   ;;  %s708_s1 = inlined_call_operand.hbm [shape: bf16[32,128], index: 1, kind: input, shape index: {}]   ;;  %s709_s2 = inlined_call_operand.vmem [shape: bf16[128,128], index: 2, kind: input, shape index: {}]   ;;  %s710_s3 = inlined_call_operand.vmem [shape: bf16[128,64], index: 3, kind: input, shape index: {}]   ;;  %s711_s4 = inlined_call_operand.vmem [shape: bf16[64,128], index: 4, kind: input, shape index: {}]   ;;  %s712_s5 = inlined_call_operand.hbm [shape: f32[4,128], index: 5, kind: input, shape index: {}]   ;;  %s713_s6 = inlined_call_operand.hbm [shape: bf16[16,128], index: 6, kind: output, shape index: {}]  }
   0x1   :  { %12 = vsyncpa [#allocation6], 0 }
   0x2   :  { %13 = vsyncpa [#allocation4], 0  ;;  %s31_s23 = sshll.u32 %s708_s1, 4  ;;  %s585_s24 = smov [#allocation5]   ;;  %s32_s23 = int_to_ptr.hbm [resolvable:$true] %s31_s23 }
   0x3   :  { %s33_s25 = sshll.u32 %s585_s24, 4  ;;  %s18_s28 = sshll.u32 %s707_s0, 4  ;;  %s34_s25 = int_to_ptr.vmem [resolvable:$true] %s33_s25  ;;  %s19_s28 = int_to_ptr.hbm [resolvable:$true] %s18_s28 }
   0x4   :  { %s586_s29 = smov 64   ;;  %s587_s30 = smov 4  }
   0x5   :  { %39 = dma.hbm_to_vmem [thread:$0]  %s32_s23, 256, %s34_s25, [#allocation6], %s586_s29, %s586_s29, %s587_s30  }
   0x6   :  { %s588_s7 = smov [#allocation2]   ;;  %s51_s1 = sshll.u32 %s712_s5, 4  ;;  %s52_s1 = int_to_ptr.hbm [resolvable:$true] %s51_s1 }
   0x7   :  { %s20_s8 = sshll.u32 %s588_s7, 4  ;;  %s589_s0 = smov [#allocation7]   ;;  %s21_s8 = int_to_ptr.vmem [resolvable:$true] %s20_s8 }
   0x8   :  { %26 = dma.hbm_to_vmem [thread:$0]  %s19_s28, 128, %s21_s8, [#allocation3], %s586_s29, %s586_s29, %s587_s30  }
   0x9   :  { %s53_s11 = sshll.u32 %s589_s0, 4  ;;  %s54_s11 = int_to_ptr.vmem [resolvable:$true] %s53_s11 }
   0xa   :  { %56 = dma.hbm_to_vmem [thread:$0]  %s52_s1, 64, %s54_s11, [#allocation6]  }
   0xb   :  { %579 = dma.done.wait [#allocation3], 128  }
   0xc   :  { %580 = vsyncadd [#allocation3], 4294967168 }
   0xd   :  { %581 = dma.done.wait [#allocation6], 320  }
   0xe   :  { %582 = vsyncadd [#allocation6], 4294966976  ;;  %v451_v0 = vld [vmem:[#allocation5 + $0x8] sm:$0xff]  ;;  %v459_v1 = vld [vmem:[%s709_s2 + $0x38] sm:$0xff]  ;;  %vm95_vm0 = vcmask 261120   ;;  %vm313_vm1 = vcmask 523264  }
   0xf   :  { %105 = vmatpush.bf16.msra.mxu0 %v451_v0  ;;  %v450_v2 = vld [vmem:[#allocation5] sm:$0xff]  ;;  %181 = vmatpush.bf16.msra.mxu1 %v459_v1  ;;  %v458_v3 = vld [vmem:[%s709_s2 + $0x30] sm:$0xff]  ;;  %v449_v4 = vld [vmem:[#allocation2] sm:$0xff]  ;;  %s590_s24 = smov [#allocation8]  }
  0x10   :  { %v457_v5 = vld [vmem:[%s709_s2 + $0x28] sm:$0xff]  ;;  %v456_v6 = vld [vmem:[%s709_s2 + $0x20] sm:$0xff]  ;;  %v455_v7 = vld [vmem:[%s709_s2 + $0x18] sm:$0xff]  ;;  %s339_s25 = sshll.u32 %s590_s24, 4  ;;  %s340_s25 = int_to_ptr.vmem [resolvable:$true] %s339_s25 }
  0x11   :  { %v454_v8 = vld [vmem:[%s709_s2 + $0x10] sm:$0xff]  ;;  %v453_v9 = vld [vmem:[%s709_s2 + $0x8] sm:$0xff]  ;;  %v452_v10 = vld [vmem:[%s709_s2] sm:$0xff] }
  0x12   :  { %v467_v11 = vld [vmem:[%s710_s3 + $0x38] sm:$0xff]  ;;  %v466_v12 = vld [vmem:[%s710_s3 + $0x30] sm:$0xff]  ;;  %v465_v13 = vld [vmem:[%s710_s3 + $0x28] sm:$0xff] }
  0x13   :  { %106 = vmatpush.bf16.msra.mxu0 %v450_v2  ;;  %182 = vmatpush.bf16.msra.mxu1 %v458_v3  ;;  %v464_v14 = vld [vmem:[%s710_s3 + $0x20] sm:$0xff]  ;;  %v70_v15 = vld [vmem:[#allocation7] sm:$0xf]  ;;  %v462_v25 = vld [vmem:[%s710_s3 + $0x10] sm:$0xff] }
  0x14   :  { %263 = vmatpush.bf16.msra.mxu2 %v467_v11  ;;  %v77_v17 = vperm.slane %v70_v15, 0  ;;  %v463_v24 = vld [vmem:[%s710_s3 + $0x18] sm:$0xff]  ;;  %v461_v26 = vld [vmem:[%s710_s3 + $0x8] sm:$0xff]  ;;  %v460_v27 = vld [vmem:[%s710_s3] sm:$0xff]  ;;  %v132_v29 = vperm.slane %v70_v15, 1  ;;  %v214_v41 = vperm.slane %v70_v15, 2 }
  0x15   :  { %v471_v36 = vld [vmem:[%s711_s4 + $0x18] sm:$0xff]  ;;  %v470_v37 = vld [vmem:[%s711_s4 + $0x10] sm:$0xff]  ;;  %v469_v38 = vld [vmem:[%s711_s4 + $0x8] sm:$0xff]  ;;  %v288_v49 = vperm.slane %v70_v15, 3 }
  0x16   :  { %367 = vmatmul.msk.bf16.vlgmr.msra.gmra.mxu0 %vm95_vm0, %v449_v4  ;;  %321 = vmatpush.bf16.msra.mxu3 %v471_v36  ;;  %v468_v39 = vld [vmem:[%s711_s4] sm:$0xff]  ;;  %s341_s4 = sshll.u32 %s713_s6, 4  ;;  %s342_s4 = int_to_ptr.hbm [resolvable:$true] %s341_s4 }
  0x17   :  { %183 = vmatpush.bf16.msra.mxu1 %v457_v5 }
  0x18   :  { %264 = vmatpush.bf16.msra.mxu2 %v466_v12 }
  0x1a   :  { %322 = vmatpush.bf16.msra.mxu3 %v470_v37 }
  0x1b   :  { %184 = vmatpush.bf16.msra.mxu1 %v456_v6 }
  0x1c   :  { %265 = vmatpush.bf16.msra.mxu2 %v465_v13 }
  0x1e   :  { %323 = vmatpush.bf16.msra.mxu3 %v469_v38 }
  0x1f   :  { %185 = vmatpush.bf16.msra.mxu1 %v455_v7 }
  0x20   :  { %266 = vmatpush.bf16.msra.mxu2 %v464_v14 }
  0x22   :  { %324 = vmatpush.bf16.msra.mxu3 %v468_v39 }
  0x23   :  { %186 = vmatpush.bf16.msra.mxu1 %v454_v8 }
  0x24   :  { %267 = vmatpush.bf16.msra.mxu2 %v463_v24 }
  0x27   :  { %187 = vmatpush.bf16.msra.mxu1 %v453_v9 }
  0x28   :  { %268 = vmatpush.bf16.msra.mxu2 %v462_v25 }
  0x2b   :  { %188 = vmatpush.bf16.msra.mxu1 %v452_v10 }
  0x2c   :  { %269 = vmatpush.bf16.msra.mxu2 %v461_v26 }
  0x30   :  { %270 = vmatpush.bf16.msra.mxu2 %v460_v27 }
  0x93   :  { %v108_v16 = vpop.f32.mrf.mxu0 }
  0x94   :  { %v109_v18 = vadd.f32 %v108_v16, %v77_v17 }
  0x96   :  { %v113_v21 = vmax.f32 %v109_v18, 0.0 }
  0x9b   :  { %v110_v19 = vpop.f32.mrf.mxu0 }
  0x9c   :  { %v111_v20 = vadd.f32 %v110_v19, %v77_v17 }
  0x9e   :  { %v114_v22 = vmax.f32 %v111_v20, 0.0 }
  0xa0   :  { %v115_v23 = vpack.c.bf16 %v114_v22, %v113_v21 }
  0xa2   :  { %189 = vmatmul.bf16.vlgmr.msra.gmra.mxu1 %v115_v23 }
 0x11f   :  { %v190_v28 = vpop.f32.mrf.mxu1 }
 0x120   :  { %v191_v30 = vadd.f32 %v190_v28, %v132_v29 }
 0x122   :  { %v195_v33 = vmax.f32 %v191_v30, 0.0 }
 0x127   :  { %v192_v31 = vpop.f32.mrf.mxu1 }
 0x128   :  { %v193_v32 = vadd.f32 %v192_v31, %v132_v29 }
 0x12a   :  { %v196_v34 = vmax.f32 %v193_v32, 0.0 }
 0x12c   :  { %v197_v35 = vpack.c.bf16 %v196_v34, %v195_v33 }
 0x12e   :  { %271 = vmatmul.bf16.vlgmr.msra.gmra.mxu2 %v197_v35 }
 0x1b1   :  { %v272_v40 = vpop.f32.mrf.mxu2 }
 0x1b2   :  { %v273_v42 = vadd.f32 %v272_v40, %v214_v41 }
 0x1b4   :  { %v277_v45 = vmax.f32 %v273_v42, 0.0 }
 0x1b9   :  { %v274_v43 = vpop.f32.mrf.mxu2 }
 0x1ba   :  { %v275_v44 = vadd.f32 %v274_v43, %v214_v41 }
 0x1bc   :  { %v278_v46 = vmax.f32 %v275_v44, 0.0 }
 0x1be   :  { %v279_v47 = vpack.c.bf16 %v278_v46, %v277_v45 }
 0x1c0   :  { %448 = vmatmul.msk.bf16.vlgmr.msra.gmra.mxu3 %vm313_vm1, %v279_v47 }
 0x243   :  { %v326_v48 = vpop.f32.mrf.mxu3 }
 0x244   :  { %v327_v51 = vadd.f32 %v326_v48, %v288_v49 }
 0x24b   :  { %v328_v50 = vpop.f32.mrf.mxu3 }
 0x24c   :  { %v329_v52 = vadd.f32 %v328_v50, %v288_v49 }
 0x24e   :  { %v475_v53 = vpack.c.bf16 %v329_v52, %v327_v51 }
 0x250   :  { %476 = vst [vmem:[#allocation8] sm:$0xff] %v475_v53  }
 0x251   :  { %347 = dma.vmem_to_hbm [thread:$0]  %s340_s25, 128, %s342_s4, [#allocation4], %s586_s29, %s586_s29, %s587_s30  }
 0x252   :  { %583 = dma.done.wait [#allocation4], 128  }
 0x253   :  { %584 = vsyncadd [#allocation4], 4294967168 }
 0x254   :  { %352 = vsyncpa [#allocation3], 1 }
 0x255   :  { %353 = vsyncpa [#allocation6], 1 }
 0x256   :  { %354 = vsyncpa [#allocation4], 1 }

</bundles_post_ra>
